<compile_context>
chip_gen: v7x
topology: tpu7x:2x2x1
jax: 0.10.0
libtpu: 0.0.40
codegen_flags: <defaults>
</compile_context>

<pallas_src>
import functools

import jax
import jax.numpy as jnp
from jax import lax
from jax.experimental import pallas as pl
from jax.experimental.pallas import tpu as pltpu

M_MARGIN = 16.0
S_SCALE = 2.0
NEG_FILL = -1e30          # finite "-inf" (avoids inf-inf NaNs)
LANES = 128


def _round_up(x, m):
    return ((x + m - 1) // m) * m


def _cdiv(a, b):
    return (a + b - 1) // b


def _choose_tile_n(n, hint):
    """Row tile: multiple of 8 (or == N); split into >=2 tiles when possible."""
    if n < 16:
        return n                      # one block equal to the full (tiny) dim
    if n <= 2 * hint:
        return _round_up(_cdiv(n, 2), 8)   # two roughly equal row tiles
    return hint


def _choose_tile_c(c_total, max_tile_c):
    """Return (tile_c, lane_chunked). Prefer a 128-multiple that divides C."""
    if c_total <= max_tile_c:
        return c_total, (c_total % LANES == 0)
    t = max(LANES, (max_tile_c // LANES) * LANES)
    d = t
    while d >= LANES and c_total % d != 0:
        d -= LANES
    if d >= LANES and d >= min(1024, t):
        return d, True                # exact divisor, no masking needed
    return t, True                    # ragged last class tile, masked in-kernel


def _maybe_buffered_spec(block_shape, index_map, n_buf):
    if n_buf > 2:
        try:
            return pl.BlockSpec(block_shape, index_map,
                                pipeline_mode=pl.Buffered(n_buf))
        except (TypeError, AttributeError):
            pass
    return pl.BlockSpec(block_shape, index_map)


def _make_kernel(tile_c, c_total, lane_chunked):
    """Kernel body for a static tiling config. Grid = (row_tiles, class_tiles)."""
    rem_cols = c_total % tile_c if lane_chunked else 0   # ragged last class tile?

    def kernel(logits_ref, tgt_ref, out_ref, m_sc, s_sc):
        cls_idx = pl.program_id(1)
        num_cls = pl.num_programs(1)

        @pl.when(cls_idx == 0)
        def _init():
            m_sc[...] = jnp.full_like(m_sc, NEG_FILL)
            s_sc[...] = jnp.zeros_like(s_sc)

        if lane_chunked:
            n_chunks = tile_c // LANES
            tile_n = logits_ref.shape[0]
            if rem_cols:
                is_last = cls_idx == num_cls - 1
                bchunk = rem_cols // LANES            # boundary chunk (static)
                bvalid = rem_cols - bchunk * LANES    # valid lanes inside it
                lane_iota = lax.broadcasted_iota(jnp.int32, (tile_n, LANES), 1)
                blimit = jnp.where(is_last, bvalid, LANES)

            def chunk(i):
                v = logits_ref[:, i * LANES:(i + 1) * LANES].astype(jnp.float32)
                if rem_cols:
                    if i == bchunk:        # partially valid on the last tile
                        v = jnp.where(lane_iota < blimit, v, NEG_FILL)
                    elif i > bchunk:       # fully invalid on the last tile
                        v = jnp.where(is_last, NEG_FILL, v)
                return v

            # Pass 1: per-lane max of this class tile (element-wise, VALU only).
            m_tile = chunk(0)
            for i in range(1, n_chunks):
                m_tile = jnp.maximum(m_tile, chunk(i))
            m_prev = m_sc[...]
            m_new = jnp.maximum(m_prev, m_tile)

            # Pass 2: accumulate exp against the updated per-lane max.
            s_tile = jnp.exp(chunk(0) - m_new)
            for i in range(1, n_chunks):
                s_tile = s_tile + jnp.exp(chunk(i) - m_new)

            s_sc[...] = s_sc[...] * jnp.exp(m_prev - m_new) + s_tile
            m_sc[...] = m_new
        else:
            # Small / non-128-multiple C: single class tile, plain row reduce.
            x = logits_ref[...].astype(jnp.float32)
            m_prev = m_sc[...]
            m_new = jnp.maximum(m_prev, jnp.max(x, axis=-1, keepdims=True))
            s_sc[...] = s_sc[...] * jnp.exp(m_prev - m_new) + jnp.sum(
                jnp.exp(x - m_new), axis=-1, keepdims=True)
            m_sc[...] = m_new

        @pl.when(cls_idx == num_cls - 1)
        def _finalize():
            if lane_chunked:
                m_lane = m_sc[...]                                  # (tile_n, 128)
                m_row = jnp.max(m_lane, axis=-1, keepdims=True)     # XLU once/row tile
                s_row = jnp.sum(s_sc[...] * jnp.exp(m_lane - m_row),
                                axis=-1, keepdims=True)
            else:
                m_row = m_sc[...]
                s_row = s_sc[...]
            c = tgt_ref[...].astype(jnp.float32)                    # (tile_n, 1)
            val = jnp.where(c > 0.0, (c - M_MARGIN) / S_SCALE,
                            (c - M_MARGIN) * S_SCALE)
            # Replace the target's contribution exp(c - m) by exp(val - m).
            # val < c <= m_row always; the clamp guards against cancellation.
            s_corr = jnp.maximum(s_row - jnp.exp(c - m_row), 0.0) \
                     + jnp.exp(val - m_row)
            out_ref[...] = -(val - m_row - jnp.log(s_corr))

    return kernel


@functools.partial(jax.jit, static_argnames=("tile_n", "max_tile_c"))
def lm_softmax_loss(logits, labels, *, tile_n=256, max_tile_c=None):
    """logits: (N, C) float (f32 / bf16), labels: (N,) int -> scalar f32 loss."""
    n, c_total = logits.shape
    if n == 0 or c_total == 0:
        return jnp.zeros((), jnp.float32)

    itemsize = jnp.dtype(logits.dtype).itemsize
    tile_n = max(8, (int(tile_n) // 8) * 8)
    tile_n = _choose_tile_n(n, tile_n)
    if max_tile_c is None:
        # ~8 MiB logits block; 3 buffers + scratch stay well under 32 MiB VMEM.
        max_tile_c = ((8 << 20) // (tile_n * itemsize)) // LANES * LANES
        max_tile_c = int(min(max(max_tile_c, LANES), 16384))
    tile_c, lane_chunked = _choose_tile_c(c_total, int(max_tile_c))

    n_row_tiles = _cdiv(n, tile_n)
    n_cls_tiles = _cdiv(c_total, tile_c)
    grid = (n_row_tiles, n_cls_tiles)

    # Target logit gathered once outside the kernel (touches only N elements).
    tgt = jnp.take_along_axis(
        logits, labels.astype(jnp.int32).reshape(n, 1), axis=1).astype(jnp.float32)

    acc_w = LANES if lane_chunked else 1
    block_bytes = tile_n * tile_c * itemsize
    n_buf = 3 if n_cls_tiles >= 3 else 2
    vmem_limit = int(min(
        max(n_buf * block_bytes + 2 * tile_n * acc_w * 4 + (4 << 20), 8 << 20),
        64 << 20))

    kernel = _make_kernel(tile_c, c_total, lane_chunked)
    logits_spec = _maybe_buffered_spec((tile_n, tile_c), lambda i, j: (i, j), n_buf)

    per_row_nll = pl.pallas_call(
        kernel,
        out_shape=jax.ShapeDtypeStruct((n, 1), jnp.float32),
        grid=grid,
        in_specs=[
            logits_spec,
            pl.BlockSpec((tile_n, 1), lambda i, j: (i, 0)),
        ],
        out_specs=pl.BlockSpec((tile_n, 1), lambda i, j: (i, 0)),
        scratch_shapes=[
            pltpu.VMEM((tile_n, acc_w), jnp.float32),   # running per-lane max
            pltpu.VMEM((tile_n, acc_w), jnp.float32),   # running per-lane sum(exp)
        ],
        compiler_params=pltpu.CompilerParams(
            dimension_semantics=("parallel", "arbitrary"),
            vmem_limit_bytes=vmem_limit,
        ),
    )(logits, tgt)

    # Tiny mean epilogue stays in XLA (keeps the row axis fully parallel).
    return jnp.mean(per_row_nll)


def lm_softmax_loss_ref(logits, labels):
    """Pure-JAX reference implementing the same semantics."""
    logits = logits.astype(jnp.float32)
    c = jnp.take_along_axis(logits, labels[:, None], axis=1)          # (N, 1)
    val = jnp.where(c > 0.0, (c - M_MARGIN) / S_SCALE, (c - M_MARGIN) * S_SCALE)
    onehot = jax.nn.one_hot(labels, logits.shape[1], dtype=bool)
    x_mod = jnp.where(onehot, val, logits)
    logp = jax.nn.log_softmax(x_mod, axis=-1)
    tgt = jnp.take_along_axis(logp, labels[:, None], axis=1)[:, 0]
    return -jnp.mean(tgt)


if __name__ == "__main__":
    key = jax.random.PRNGKey(0)
    ks = jax.random.split(key, 8)

    # Case 1: tiny single-tile shape (matches the module's toy use).
    N1, C1 = 8, 32
    x1 = jax.random.normal(ks[0], (N1, C1), dtype=jnp.float32) * 4.0
    y1 = jax.random.randint(ks[1], (N1,), 0, C1, dtype=jnp.int32)
    l1 = jax.block_until_ready(lm_softmax_loss(x1, y1))
    r1 = lm_softmax_loss_ref(x1, y1)
    assert jnp.allclose(l1, r1, rtol=1e-5, atol=1e-5), (l1, r1)

    # Case 2: multi class-tile online-LSE with a masked ragged last class tile
    # and a ragged last row tile (no padding anywhere).
    N2, C2 = 20, 300
    x2 = jax.random.normal(ks[2], (N2, C2), dtype=jnp.float32) * 4.0
    y2 = jax.random.randint(ks[3], (N2,), 0, C2, dtype=jnp.int32)
    l2 = jax.block_until_ready(lm_softmax_loss(x2, y2, max_tile_c=256))
    r2 = lm_softmax_loss_ref(x2, y2)
    assert jnp.allclose(l2, r2, rtol=1e-5, atol=1e-5), (l2, r2)

    # Case 3: exact-divisor class tiling (no mask), 4 class tiles, ragged rows.
    N3, C3 = 24, 512
    x3 = jax.random.normal(ks[4], (N3, C3), dtype=jnp.float32) * 4.0
    y3 = jax.random.randint(ks[5], (N3,), 0, C3, dtype=jnp.int32)
    l3 = jax.block_until_ready(lm_softmax_loss(x3, y3, max_tile_c=128))
    r3 = lm_softmax_loss_ref(x3, y3)
    assert jnp.allclose(l3, r3, rtol=1e-5, atol=1e-5), (l3, r3)

    # Case 4: bf16 inputs, 3 class tiles (exercises the deeper pipeline path).
    N4, C4 = 32, 384
    x4 = (jax.random.normal(ks[6], (N4, C4), dtype=jnp.float32) * 4.0
          ).astype(jnp.bfloat16)
    y4 = jax.random.randint(ks[7], (N4,), 0, C4, dtype=jnp.int32)
    l4 = jax.block_until_ready(lm_softmax_loss(x4, y4, max_tile_c=128))
    r4 = lm_softmax_loss_ref(x4, y4)
    assert jnp.allclose(l4, r4, rtol=2e-3, atol=2e-3), (l4, r4)

    print("KERNEL_OK")
</pallas_src>

<mosaic_0001>
module attributes {stable_mosaic.version = 11 : i64} {
  func.func @kernel(%arg0: i32, %arg1: i32, %arg2: memref<8x32xf32, #tpu.memory_space<vmem>>, %arg3: memref<8x1xf32, #tpu.memory_space<vmem>>, %arg4: memref<8x1xf32, #tpu.memory_space<vmem>>, %arg5: memref<8x1xf32, #tpu.memory_space<vmem>>, %arg6: memref<8x1xf32, #tpu.memory_space<vmem>>) attributes {dimension_semantics = [#tpu.dimension_semantics<parallel>, #tpu.dimension_semantics<arbitrary>], iteration_bounds = array<i64: 1, 1>, scalar_prefetch = 0 : i64, scratch_operands = 2 : i64, tpu.core_type = #tpu.core_type<tc>, window_params = [{transform_indices = @transform_0, window_bounds = array<i64: 8, 32>}, {transform_indices = @transform_1, window_bounds = array<i64: 8, 1>}, {transform_indices = @transform_2, window_bounds = array<i64: 8, 1>}]} {
    %c0_i32 = arith.constant 0 : i32
    %0 = arith.cmpi eq, %arg1, %c0_i32 : i32
    %1 = arith.extui %0 : i1 to i32
    %c0_i32_0 = arith.constant 0 : i32
    %2 = arith.cmpi ne, %1, %c0_i32_0 : i32
    scf.if %2 {
      %cst_13 = arith.constant -1.000000e+30 : f32
      %23 = vector.broadcast %cst_13 : f32 to vector<8x1xf32>
      %c0_14 = arith.constant 0 : index
      %c0_15 = arith.constant 0 : index
      %24 = vector.load %arg5[%c0_14, %c0_15] : memref<8x1xf32, #tpu.memory_space<vmem>>, vector<8x1xf32>
      tpu.vector_store %arg5[%c0_14, %c0_15], %23 {strides = array<i32>} : memref<8x1xf32, #tpu.memory_space<vmem>>, vector<8x1xf32>,
      %cst_16 = arith.constant 0.000000e+00 : f32
      %25 = vector.broadcast %cst_16 : f32 to vector<8x1xf32>
      %c0_17 = arith.constant 0 : index
      %c0_18 = arith.constant 0 : index
      %26 = vector.load %arg6[%c0_17, %c0_18] : memref<8x1xf32, #tpu.memory_space<vmem>>, vector<8x1xf32>
      tpu.vector_store %arg6[%c0_17, %c0_18], %25 {strides = array<i32>} : memref<8x1xf32, #tpu.memory_space<vmem>>, vector<8x1xf32>,
    } else {
    }
    %c0 = arith.constant 0 : index
    %c0_1 = arith.constant 0 : index
    %3 = vector.load %arg2[%c0, %c0_1] : memref<8x32xf32, #tpu.memory_space<vmem>>, vector<8x32xf32>
    %c0_2 = arith.constant 0 : index
    %c0_3 = arith.constant 0 : index
    %4 = vector.load %arg5[%c0_2, %c0_3] : memref<8x1xf32, #tpu.memory_space<vmem>>, vector<8x1xf32>
    %cst = arith.constant dense<0xFF800000> : vector<8xf32>
    %5 = vector.multi_reduction <maximumf>, %3, %cst [1] : vector<8x32xf32> to vector<8xf32>
    %6 = vector.shape_cast %5 : vector<8xf32> to vector<8x1xf32>
    %7 = arith.maximumf %4, %6 : vector<8x1xf32>
    %c0_4 = arith.constant 0 : index
    %c0_5 = arith.constant 0 : index
    %8 = vector.load %arg6[%c0_4, %c0_5] : memref<8x1xf32, #tpu.memory_space<vmem>>, vector<8x1xf32>
    %9 = arith.subf %4, %7 : vector<8x1xf32>
    %10 = math.exp %9 : vector<8x1xf32>
    %11 = arith.mulf %8, %10 : vector<8x1xf32>
    %12 = vector.broadcast %7 : vector<8x1xf32> to vector<8x32xf32>
    %13 = arith.subf %3, %12 : vector<8x32xf32>
    %14 = math.exp %13 : vector<8x32xf32>
    %cst_6 = arith.constant dense<0.000000e+00> : vector<8xf32>
    %15 = vector.multi_reduction <add>, %14, %cst_6 [1] : vector<8x32xf32> to vector<8xf32>
    %16 = vector.shape_cast %15 : vector<8xf32> to vector<8x1xf32>
    %17 = arith.addf %11, %16 : vector<8x1xf32>
    %c0_7 = arith.constant 0 : index
    %c0_8 = arith.constant 0 : index
    %18 = vector.load %arg6[%c0_7, %c0_8] : memref<8x1xf32, #tpu.memory_space<vmem>>, vector<8x1xf32>
    tpu.vector_store %arg6[%c0_7, %c0_8], %17 {strides = array<i32>} : memref<8x1xf32, #tpu.memory_space<vmem>>, vector<8x1xf32>,
    %c0_9 = arith.constant 0 : index
    %c0_10 = arith.constant 0 : index
    %19 = vector.load %arg5[%c0_9, %c0_10] : memref<8x1xf32, #tpu.memory_space<vmem>>, vector<8x1xf32>
    tpu.vector_store %arg5[%c0_9, %c0_10], %7 {strides = array<i32>} : memref<8x1xf32, #tpu.memory_space<vmem>>, vector<8x1xf32>,
    %c0_i32_11 = arith.constant 0 : i32
    %20 = arith.cmpi eq, %arg1, %c0_i32_11 : i32
    %21 = arith.extui %20 : i1 to i32
    %c0_i32_12 = arith.constant 0 : i32
    %22 = arith.cmpi ne, %21, %c0_i32_12 : i32
    scf.if %22 {
      %c0_13 = arith.constant 0 : index
      %c0_14 = arith.constant 0 : index
      %23 = vector.load %arg5[%c0_13, %c0_14] : memref<8x1xf32, #tpu.memory_space<vmem>>, vector<8x1xf32>
      %c0_15 = arith.constant 0 : index
      %c0_16 = arith.constant 0 : index
      %24 = vector.load %arg6[%c0_15, %c0_16] : memref<8x1xf32, #tpu.memory_space<vmem>>, vector<8x1xf32>
      %c0_17 = arith.constant 0 : index
      %c0_18 = arith.constant 0 : index
      %25 = vector.load %arg3[%c0_17, %c0_18] : memref<8x1xf32, #tpu.memory_space<vmem>>, vector<8x1xf32>
      %cst_19 = arith.constant 0.000000e+00 : f32
      %26 = vector.broadcast %cst_19 : f32 to vector<8x1xf32>
      %27 = arith.cmpf ogt, %25, %26 : vector<8x1xf32>
      %cst_20 = arith.constant 1.600000e+01 : f32
      %28 = vector.broadcast %cst_20 : f32 to vector<8x1xf32>
      %29 = arith.subf %25, %28 : vector<8x1xf32>
      %cst_21 = arith.constant 2.000000e+00 : f32
      %30 = vector.broadcast %cst_21 : f32 to vector<8x1xf32>
      %31 = arith.divf %29, %30 : vector<8x1xf32>
      %cst_22 = arith.constant 1.600000e+01 : f32
      %32 = vector.broadcast %cst_22 : f32 to vector<8x1xf32>
      %33 = arith.subf %25, %32 : vector<8x1xf32>
      %cst_23 = arith.constant 2.000000e+00 : f32
      %34 = vector.broadcast %cst_23 : f32 to vector<8x1xf32>
      %35 = arith.mulf %33, %34 : vector<8x1xf32>
      %36 = arith.select %27, %31, %35 : vector<8x1xi1>, vector<8x1xf32>
      %37 = arith.subf %25, %23 : vector<8x1xf32>
      %38 = math.exp %37 : vector<8x1xf32>
      %39 = arith.subf %24, %38 : vector<8x1xf32>
      %cst_24 = arith.constant 0.000000e+00 : f32
      %40 = vector.broadcast %cst_24 : f32 to vector<8x1xf32>
      %41 = arith.maximumf %39, %40 : vector<8x1xf32>
      %42 = arith.subf %36, %23 : vector<8x1xf32>
      %43 = math.exp %42 : vector<8x1xf32>
      %44 = arith.addf %41, %43 : vector<8x1xf32>
      %45 = arith.subf %36, %23 : vector<8x1xf32>
      %46 = math.log %44 : vector<8x1xf32>
      %47 = arith.subf %45, %46 : vector<8x1xf32>
      %cst_25 = arith.constant 0.000000e+00 : f32
      %48 = vector.broadcast %cst_25 : f32 to vector<8x1xf32>
      %49 = arith.subf %48, %47 : vector<8x1xf32>
      %c0_26 = arith.constant 0 : index
      %c0_27 = arith.constant 0 : index
      %50 = vector.load %arg4[%c0_26, %c0_27] : memref<8x1xf32, #tpu.memory_space<vmem>>, vector<8x1xf32>
      tpu.vector_store %arg4[%c0_26, %c0_27], %49 {strides = array<i32>} : memref<8x1xf32, #tpu.memory_space<vmem>>, vector<8x1xf32>,
    } else {
    }
    return
  }
  func.func @transform_0(%arg0: i32, %arg1: i32) -> (i32, i32) {
    %c0_i32 = arith.constant 0 : i32
    return %arg0, %arg1 : i32, i32
  }
  func.func @transform_1(%arg0: i32, %arg1: i32) -> (i32, i32) {
    %c0_i32 = arith.constant 0 : i32
    %c0_i32_0 = arith.constant 0 : i32
    return %arg0, %c0_i32 : i32, i32
  }
  func.func @transform_2(%arg0: i32, %arg1: i32) -> (i32, i32) {
    %c0_i32 = arith.constant 0 : i32
    %c0_i32_0 = arith.constant 0 : i32
    return %arg0, %c0_i32 : i32, i32
  }
}

</mosaic_0001>

<bundles_post_ra>
// kernel: lm_softmax_loss.1
= control target key start
LH: loop header
LB: loop body
LE: loop exit
PB: predicated region body
PF: predicated region fallthrough
CT: control target
= control target key end

     0   :  { %vm20_vm0 = vcmask 261120   ;;  %vm15_vm1 = vcmask 7168   ;;  %v90_v1 = vmov -1e+30   ;;  %v91_v3 = vmov 0   ;;  %s124_s0 = inlined_call_operand.vmem [shape: f32[8,32], index: 0, kind: input, shape index: {}]   ;;  %s125_s1 = inlined_call_operand.vmem [shape: f32[8,1], index: 1, kind: input, shape index: {}]   ;;  %s126_s2 = inlined_call_operand.vmem [shape: f32[8,1], index: 2, kind: output, shape index: {}]  }
   0x1   :  { %v18_v0 = vld [vmem:[%s124_s0] sm:$0xff]  ;;  %16 = vst.msk [vmem:[#allocation2] sm:$0xff] %vm15_vm1, %v90_v1  ;;  %79 = vset.pattern.permute.xlu0 %v91_v3  ;;  %v92_v4 = vmov 0.0  }
   0x2   :  { %v21_v2 = vsel %vm20_vm0, %v18_v0, -inf  ;;  %17 = vst.msk [vmem:[#allocation3] sm:$0xff] %vm15_vm1, %v92_v4  ;;  %v50_v14 = vld [vmem:[%s125_s1] sm:$0xff] }
   0x3   :  { %22 = vmax.xlane.f32.xlu0 %v21_v2  ;;  %v75_v16 = vadd.f32 -16.0, %v50_v14  ;;  %vm51_vm2 = vcmp.gt.f32.partialorder %v50_v14, 0.0 }
   0x5   :  { %v54_v17 = vmul.f32 0.5, %v75_v16  ;;  %v55_v18 = vmul.f32 2.0, %v75_v16 }
   0x7   :  { %v56_v21 = vsel %vm51_vm2, %v54_v17, %v55_v18 }
   0x8   :  { %v19_v5 = vld [vmem:[#allocation2] sm:$0xff] }
   0x9   :  { %v25_v25 = vld [vmem:[#allocation3] sm:$0xff] }
  0x90   :  { %v23_v6 = vpop.xlane.xlu0 %22 }
  0x91   :  { %v24_v7 = vmax.f32 %v19_v5, %v23_v6 }
  0x93   :  { %v26_v8 = vsub.f32 %v19_v5, %v24_v7  ;;  %44 = vst.msk [vmem:[#allocation2] sm:$0xff] %vm15_vm1, %v24_v7  ;;  %32 = vperm.xlu0 %79, %v24_v7  }
  0x95   :  { %v27_v15 = vmul.f32 1.442695, %v26_v8 }
  0x9a   :  { %v48_v19 = vld [vmem:[#allocation2] sm:$0xff] }
  0x9b   :  { %v57_v20 = vsub.f32 %v50_v14, %v48_v19  ;;  %v62_v24 = vsub.f32 %v56_v21, %v48_v19 }
  0x9d   :  { %v58_v23 = vmul.f32 1.442695, %v57_v20  ;;  %v63_v27 = vmul.f32 1.442695, %v62_v24 }
 0x112   :  { %v33_v9 = vpop.permute.xlu0 %32 }
 0x113   :  { %v35_v10 = vsub.f32 %v18_v0, %v33_v9 }
 0x115   :  { %v36_v11 = vmul.f32 1.442695, %v35_v10 }
 0x117   :  { %80 = vpow2.f32 %v36_v11 }
 0x118   :  { %82 = vpow2.f32 %v27_v15 }
 0x119   :  { %84 = vpow2.f32 %v58_v23 }
 0x11a   :  { %86 = vpow2.f32 %v63_v27 }
 0x121   :  { %v81_v12 = vpop.eup %80 }
 0x122   :  { %v38_v13 = vsel %vm20_vm0, %v81_v12, 0.0  ;;  %v83_v22 = vpop.eup %82 }
 0x123   :  { %39 = vadd.xlane.f32.xlu1 %v38_v13  ;;  %v29_v26 = vmul.f32 %v83_v22, %v25_v25  ;;  %v85_v30 = vpop.eup %84 }
 0x124   :  { %v87_v34 = vpop.eup %86 }
 0x1b0   :  { %v40_v28 = vpop.xlane.xlu1 %39 }
 0x1b1   :  { %v41_v29 = vadd.f32 %v40_v28, %v29_v26 }
 0x1b3   :  { %43 = vst.msk [vmem:[#allocation3] sm:$0xff] %vm15_vm1, %v41_v29 }
 0x1ba   :  { %v49_v31 = vld [vmem:[#allocation3] sm:$0xff] }
 0x1bb   :  { %v60_v32 = vsub.f32 %v49_v31, %v85_v30 }
 0x1bd   :  { %v61_v33 = vmax.f32 %v60_v32, 0.0 }
 0x1bf   :  { %v65_v35 = vadd.f32 %v87_v34, %v61_v33 }
 0x1c1   :  { %88 = vlog2.f32 %v65_v35 }
 0x1cb   :  { %v89_v36 = vpop.eup %88 }
 0x1cc   :  { %v67_v37 = vmul.f32 0.6931472, %v89_v36 }
 0x1ce   :  { %v68_v38 = vsub.f32 %v62_v24, %v67_v37 }
 0x1d0   :  { %v69_v39 = vsub.f32 0.0, %v68_v38 }
 0x1d2   :  { %70 = vst.msk [vmem:[%s126_s2] sm:$0xff] %vm15_vm1, %v69_v39 }

</bundles_post_ra>
